<compile_context>
chip_gen: v7x
topology: tpu7x:2x2x1
jax: 0.10.0
libtpu: 0.0.40
codegen_flags: <defaults>
</compile_context>

<pallas_src>
import functools

import jax
import jax.numpy as jnp
from jax.experimental import pallas as pl
from jax.experimental.pallas import tpu as pltpu

LN_EPS = 1e-5


def _round_up(a, b):
    return (a + b - 1) // b * b


def _segmerge_kernel(x_ref, w_ref, b_ref, o_ref, *, mxu_stats):
    """LayerNorm (affine pre-folded into W/b) + Linear projection.

    x_ref: (tm, F) f32   merged-window features
    w_ref: (F, D)  bf16  folded weight  (gamma[:,None] * W^T)
    b_ref: (1, D)  f32   folded bias    (beta @ W^T + bias)
    o_ref: (tm, D)
    """
    x = x_ref[...].astype(jnp.float32)
    f = x.shape[-1]
    inv_f = 1.0 / float(f)

    if mxu_stats:
        # Small F: keep the cross-lane reductions off the XLU; the MXU is
        # nearly idle here (D << 256), so these dots are free filler.
        ones = jnp.ones((f, 1), jnp.float32)
        s1 = jnp.dot(x, ones, preferred_element_type=jnp.float32)
    else:
        s1 = jnp.sum(x, axis=-1, keepdims=True)
    mean = s1 * inv_f

    xc = x - mean
    if mxu_stats:
        s2 = jnp.dot(xc * xc, ones, preferred_element_type=jnp.float32)
    else:
        s2 = jnp.sum(xc * xc, axis=-1, keepdims=True)
    var = s2 * inv_f                      # two-pass (biased) variance, f32

    xn = xc * jax.lax.rsqrt(var + LN_EPS)

    y = jnp.dot(xn.astype(jnp.bfloat16), w_ref[...],
                preferred_element_type=jnp.float32)
    y = y + b_ref[...].astype(jnp.float32)
    o_ref[...] = y.astype(o_ref.dtype)


def _ln_linear_rows(x2d, w_bf16, b2d, *, out_dtype,
                    target_block_bytes=2 << 20,
                    vmem_budget_bytes=40 << 20):
    """Run fused LN+Linear over a row slab x2d: [N, F] -> [N, D]."""
    N, F = x2d.shape
    D = w_bf16.shape[1]

    # ---- adaptive row tile: ~target_block_bytes per input block ----
    bytes_per_row = 4 * F
    tm = max(8, (target_block_bytes // bytes_per_row) // 8 * 8)
    tm = min(tm, 4096)
    tm = min(tm, _round_up(N, 8))
    # v7x has 2 TensorCores: make sure a "parallel" grid has >= 2 steps
    # whenever there is enough work to split.
    if pl.cdiv(N, tm) == 1 and N > 8:
        tm = max(8, _round_up(pl.cdiv(N, 2), 8))

    def vmem_need(t):
        return (2 * t * F * 4                 # input block, double-buffered
                + 2 * t * D * 4               # output block, double-buffered
                + 2 * (F * D * 2)             # bf16 weight (Pallas double-buffers)
                + 2 * _round_up(D, 128) * 4   # bias
                + (2 << 20))                  # compiler-internal margin

    while vmem_need(tm) > vmem_budget_bytes and tm > 8:
        tm = max(8, (tm // 2) // 8 * 8)

    need = vmem_need(tm)
    vmem_limit = min(max(need, 16 << 20), 48 << 20)
    if need > (48 << 20):                      # huge F*D weights: must fit
        vmem_limit = need + (4 << 20)

    grid = (pl.cdiv(N, tm),)                   # no jnp.pad: last block masked
    mxu_stats = F <= 2048

    cost = pl.CostEstimate(
        flops=2 * N * F * D + (4 * N * F if mxu_stats else 0),
        transcendentals=0,
        bytes_accessed=(N * F * x2d.dtype.itemsize
                        + F * D * 2
                        + N * D * jnp.dtype(out_dtype).itemsize),
    )

    return pl.pallas_call(
        functools.partial(_segmerge_kernel, mxu_stats=mxu_stats),
        out_shape=jax.ShapeDtypeStruct((N, D), out_dtype),
        grid_spec=pltpu.PrefetchScalarGridSpec(
            num_scalar_prefetch=0,
            grid=grid,
            in_specs=[
                pl.BlockSpec((tm, F), lambda i: (i, 0)),
                pl.BlockSpec((F, D), lambda i: (0, 0)),
                pl.BlockSpec((1, D), lambda i: (0, 0)),
            ],
            out_specs=pl.BlockSpec((tm, D), lambda i: (i, 0)),
        ),
        compiler_params=pltpu.CompilerParams(
            dimension_semantics=("parallel",),
            vmem_limit_bytes=int(vmem_limit)),
        cost_estimate=cost,
    )(x2d, w_bf16, b2d)


def seg_merging_forward(x, gamma, beta, weight, bias, win_size, *,
                        target_block_bytes=2 << 20):
    """SegMerging.forward in JAX + Pallas.

    x: [B, ts_d, seg_num, d_model]
    gamma, beta: [win_size*d_model]       (LayerNorm affine)
    weight: [d_model, win_size*d_model]   (PyTorch nn.Linear layout)
    bias:   [d_model]
    """
    B, T, S, D = x.shape
    F = win_size * D
    rem = S % win_size
    Sm_full = S // win_size

    # ---- fold LN affine into the Linear (free numerics-equivalent precompute) ----
    w_t = weight.T.astype(jnp.float32)                               # (F, D)
    w_fold = gamma.astype(jnp.float32)[:, None] * w_t                # (F, D)
    b_fold = beta.astype(jnp.float32) @ w_t + bias.astype(jnp.float32)
    w_bf16 = w_fold.astype(jnp.bfloat16)
    b2d = b_fold.reshape(1, D)

    pieces = []
    if Sm_full > 0:
        # Main (complete) groups.  Window-interleave concat == contiguous
        # reshape; when rem == 0 this is the whole array and fully copy-free.
        x_main = x if rem == 0 else x[:, :, :Sm_full * win_size, :]
        x2d = x_main.reshape(B * T * Sm_full, F)
        out_main = _ln_linear_rows(x2d, w_bf16, b2d, out_dtype=x.dtype,
                                   target_block_bytes=target_block_bytes)
        pieces.append(out_main.reshape(B, T, Sm_full, D))

    if rem != 0:
        # Tail group per (b, t): last `rem` segments followed by the
        # replicated last `win_size - rem` segments (exactly torch's cat pad).
        pad = win_size - rem
        idx = jnp.concatenate([jnp.arange(S - rem, S), jnp.arange(S - pad, S)])
        x_tail = x[:, :, idx, :].reshape(B * T, F)       # tiny: B*T rows only
        out_tail = _ln_linear_rows(x_tail, w_bf16, b2d, out_dtype=x.dtype,
                                   target_block_bytes=target_block_bytes)
        pieces.append(out_tail.reshape(B, T, 1, D))

    if len(pieces) == 1:
        return pieces[0]
    # Only output bytes (D-wide, ~1/win of the input bytes) get copied here.
    return jnp.concatenate(pieces, axis=2)


def _reference(x, gamma, beta, weight, bias, win_size):
    """Pure-JAX f32 reference for correctness check (mirrors the torch code)."""
    B, T, S, D = x.shape
    pad_num = S % win_size
    if pad_num != 0:
        pad_num = win_size - pad_num
        x = jnp.concatenate([x, x[:, :, -pad_num:, :]], axis=-2)
    Sm = x.shape[2] // win_size
    F = win_size * D
    xm = x.reshape(B, T, Sm, F)
    mean = jnp.mean(xm, axis=-1, keepdims=True)
    var = jnp.mean((xm - mean) ** 2, axis=-1, keepdims=True)
    xn = (xm - mean) / jnp.sqrt(var + LN_EPS)
    xn = xn * gamma + beta
    return xn @ weight.T + bias


if __name__ == "__main__":
    # Small shapes consistent with the module: B=2, ts_d=4, seg_num=10,
    # d_model=32, win_size=4 -> exercises the replicate-pad (tail) path,
    # the masked non-divisible grid, and the MXU-stats path (F=128).
    B, T, S, D = 2, 4, 10, 32
    win_size = 4
    F = win_size * D

    key = jax.random.PRNGKey(0)
    kx, kw, kb, kg, kbe = jax.random.split(key, 5)
    x = jax.random.normal(kx, (B, T, S, D), dtype=jnp.float32)

    gamma = 1.0 + 0.1 * jax.random.normal(kg, (F,), jnp.float32)
    beta = 0.1 * jax.random.normal(kbe, (F,), jnp.float32)
    weight = jax.random.normal(kw, (D, F), jnp.float32) * 0.05
    bias = jax.random.normal(kb, (D,), jnp.float32) * 0.05

    out = jax.block_until_ready(
        seg_merging_forward(x, gamma, beta, weight, bias, win_size))
    ref = jax.block_until_ready(
        _reference(x, gamma, beta, weight, bias, win_size))

    Sm = -(-S // win_size)
    assert out.shape == (B, T, Sm, D), out.shape
    # bf16 MXU inputs -> slightly looser tolerance than pure f32.
    err = jnp.max(jnp.abs(out - ref))
    assert jnp.allclose(out, ref, atol=2e-2, rtol=2e-2), \
        f"mismatch vs reference, max abs err={err}"
    print("KERNEL_OK")
</pallas_src>

<mosaic_0001>
module attributes {stable_mosaic.version = 11 : i64} {
  func.func @_segmerge_kernel(%arg0: i32, %arg1: memref<8x128xf32, #tpu.memory_space<vmem>>, %arg2: memref<128x32xbf16, #tpu.memory_space<vmem>>, %arg3: memref<1x32xf32, #tpu.memory_space<vmem>>, %arg4: memref<8x32xf32, #tpu.memory_space<vmem>>) attributes {dimension_semantics = [#tpu.dimension_semantics<parallel>], iteration_bounds = array<i64: 2>, scalar_prefetch = 0 : i64, scratch_operands = 0 : i64, tpu.core_type = #tpu.core_type<tc>, window_params = [{transform_indices = @transform_0, window_bounds = array<i64: 8, 128>}, {pipeline_mode = #tpu.pipeline_mode<synchronous>, transform_indices = @transform_1, window_bounds = array<i64: 128, 32>}, {pipeline_mode = #tpu.pipeline_mode<synchronous>, transform_indices = @transform_2, window_bounds = array<i64: 1, 32>}, {transform_indices = @transform_3, window_bounds = array<i64: 8, 32>}]} {
    %c0 = arith.constant 0 : index
    %c0_0 = arith.constant 0 : index
    %0 = vector.load %arg1[%c0, %c0_0] : memref<8x128xf32, #tpu.memory_space<vmem>>, vector<8x128xf32>
    %cst = arith.constant 1.000000e+00 : f32
    %1 = vector.broadcast %cst : f32 to vector<128x1xf32>
    %cst_1 = arith.constant dense<0.000000e+00> : vector<8x1xf32>
    %2 = tpu.matmul %0, %1, %cst_1 {dimension_numbers = #tpu.dot_dimension_numbers<[1], [0], [0], [1], [0, 0, 1, 1], [], []>} : vector<8x128xf32>, vector<128x1xf32>, vector<8x1xf32> -> vector<8x1xf32>
    %cst_2 = arith.constant 7.812500e-03 : f32
    %3 = vector.broadcast %cst_2 : f32 to vector<8x1xf32>
    %4 = arith.mulf %2, %3 : vector<8x1xf32>
    %5 = vector.broadcast %4 : vector<8x1xf32> to vector<8x128xf32>
    %6 = arith.subf %0, %5 : vector<8x128xf32>
    %7 = arith.mulf %6, %6 : vector<8x128xf32>
    %cst_3 = arith.constant dense<0.000000e+00> : vector<8x1xf32>
    %8 = tpu.matmul %7, %1, %cst_3 {dimension_numbers = #tpu.dot_dimension_numbers<[1], [0], [0], [1], [0, 0, 1, 1], [], []>} : vector<8x128xf32>, vector<128x1xf32>, vector<8x1xf32> -> vector<8x1xf32>
    %cst_4 = arith.constant 7.812500e-03 : f32
    %9 = vector.broadcast %cst_4 : f32 to vector<8x1xf32>
    %10 = arith.mulf %8, %9 : vector<8x1xf32>
    %cst_5 = arith.constant 9.99999974E-6 : f32
    %11 = vector.broadcast %cst_5 : f32 to vector<8x1xf32>
    %12 = arith.addf %10, %11 : vector<8x1xf32>
    %13 = math.rsqrt %12 : vector<8x1xf32>
    %14 = vector.broadcast %13 : vector<8x1xf32> to vector<8x128xf32>
    %15 = arith.mulf %6, %14 : vector<8x128xf32>
    %16 = arith.truncf %15 : vector<8x128xf32> to vector<8x128xbf16>
    %c0_6 = arith.constant 0 : index
    %c0_7 = arith.constant 0 : index
    %17 = vector.load %arg2[%c0_6, %c0_7] : memref<128x32xbf16, #tpu.memory_space<vmem>>, vector<128x32xbf16>
    %cst_8 = arith.constant dense<0.000000e+00> : vector<8x32xf32>
    %18 = tpu.matmul %16, %17, %cst_8 {dimension_numbers = #tpu.dot_dimension_numbers<[1], [0], [0], [1], [0, 0, 1, 1], [], []>} : vector<8x128xbf16>, vector<128x32xbf16>, vector<8x32xf32> -> vector<8x32xf32>
    %c0_9 = arith.constant 0 : index
    %c0_10 = arith.constant 0 : index
    %19 = vector.load %arg3[%c0_9, %c0_10] : memref<1x32xf32, #tpu.memory_space<vmem>>, vector<1x32xf32>
    %20 = vector.broadcast %19 : vector<1x32xf32> to vector<8x32xf32>
    %21 = arith.addf %18, %20 : vector<8x32xf32>
    %c0_11 = arith.constant 0 : index
    %c0_12 = arith.constant 0 : index
    %22 = vector.load %arg4[%c0_11, %c0_12] : memref<8x32xf32, #tpu.memory_space<vmem>>, vector<8x32xf32>
    tpu.vector_store %arg4[%c0_11, %c0_12], %21 {strides = array<i32>} : memref<8x32xf32, #tpu.memory_space<vmem>>, vector<8x32xf32>,
    return
  }
  func.func @transform_0(%arg0: i32) -> (i32, i32) {
    %c0_i32 = arith.constant 0 : i32
    %c0_i32_0 = arith.constant 0 : i32
    return %arg0, %c0_i32 : i32, i32
  }
  func.func @transform_1(%arg0: i32) -> (i32, i32) {
    %c0_i32 = arith.constant 0 : i32
    %c0_i32_0 = arith.constant 0 : i32
    %c0_i32_1 = arith.constant 0 : i32
    return %c0_i32, %c0_i32_0 : i32, i32
  }
  func.func @transform_2(%arg0: i32) -> (i32, i32) {
    %c0_i32 = arith.constant 0 : i32
    %c0_i32_0 = arith.constant 0 : i32
    %c0_i32_1 = arith.constant 0 : i32
    return %c0_i32, %c0_i32_0 : i32, i32
  }
  func.func @transform_3(%arg0: i32) -> (i32, i32) {
    %c0_i32 = arith.constant 0 : i32
    %c0_i32_0 = arith.constant 0 : i32
    return %arg0, %c0_i32 : i32, i32
  }
}

</mosaic_0001>

<bundles_post_ra>
// kernel: tpu_custom_call.1
= control target key start
LH: loop header
LB: loop body
LE: loop exit
PB: predicated region body
PF: predicated region fallthrough
CT: control target
= control target key end

     0   :  { %8 = vsyncpa [#allocation3], 0  ;;  %s982_s0 = inlined_call_operand.vmem [shape: f32[16,128], index: 0, kind: input, shape index: {}]   ;;  %s983_s1 = inlined_call_operand.vmem [shape: bf16[128,32], index: 1, kind: input, shape index: {}]   ;;  %s984_s2 = inlined_call_operand.vmem [shape: f32[1,32], index: 2, kind: input, shape index: {}]   ;;  %s985_s3 = inlined_call_operand.hbm [shape: f32[16,32], index: 3, kind: output, shape index: {}]  }
   0x1   :  { %10 = vsyncpa [#allocation3 + $0x1], 0  ;;  %s841_s12 = smov 0   ;;  %s843_s13 = smov 0  }
   0x2   :  { %s845_s14 = smov 0   ;;  %s847_s15 = smov 0  }
   0x3 LB: > { %s862_s16 = sadd.s32 4294967295, %s813_s15   ;;  %s512_s17 = sadd.s32 4294967294, %s813_s15   ;;  %s813_s15 = sphi %s847_s15, %s991_s15   ;;  %s809_s14 = sphi %s845_s14, %s990_s14   ;;  %s805_s13 = sphi %s843_s13, %s989_s13   ;;  %s801_s12 = sphi %s841_s12, %s988_s12  }
   0x4   : > { %s866_s18 = sadd.s32 1, %s813_s15   ;;  %s91_s19 = sadd.s32 1, %s809_s14 }
   0x5   : > { %s88_s20 = ssub.s32 %s813_s15, %s866_s18  ;;  %p101_p0 = scmp.ne.s32.totalorder %s809_s14, %s805_s13 }
   0x6   : > { %p89_p1 = scmp.eq.s32.totalorder %s88_s20, 0  ;;  %p102_p2 = scmp.eq.s32.totalorder %s862_s16, 1 }
   0x7   : > { %p107_p3 = scmp.ne.s32.totalorder %s805_s13, %s801_s12  ;;  %p108_p4 = scmp.eq.s32.totalorder %s512_s17, 1 }
   0x8   : > { %s877_s21 = scalar_select %p89_p1, %s809_s14, %s91_s19  }
   0x9   : > { %p879_p5 = por %p102_p2, %p101_p0  ;;  %p883_p6 = por %p108_p4, %p107_p3 }
   0xa   : > { %p515_p7 = scmp.ge.s32.totalorder %s813_s15, 1  ;;  %p139_p8 = scmp.lt.s32.totalorder %s813_s15, 3 }
   0xc   : > { %p140_p9 = pnand %p515_p7, %p139_p8 }
   0xd   : > { %v815_v0 = vmov (!%p140_p9), 0.0|0.0   ;;  %vm816_vm0 = vmmov (!%p140_p9), 0   ;;  %v817_v1 = vmov (!%p140_p9), 0.0   ;;  %v818_v2 = vmov (!%p140_p9), 1.0|1.0   ;;  %p162_p10 = scmp.lt.s32.totalorder (!%p140_p9), %s862_s16, 1 }
   0xe   : > { %143 = sbr.rel (%p140_p9) target bundleno = 979 (0x3d3), region = 32  ;;  %664 = vmatprep.subr.bf16.mxu1 (!%p140_p9), %v815_v0  ;;  %606 = vmatprep.mubr.msk.f32.mxu1 (!%p140_p9), %vm816_vm0, %v817_v1  ;;  %v819_v4 = vmov (!%p140_p9), 0   ;;  %v741_v11 = vld [vmem:[%s983_s1] sm:$0xff] (!%p140_p9)   ;;  %v742_v12 = vld [vmem:[%s983_s1 + $0x8] sm:$0xff] (!%p140_p9)   ;;  %v743_v13 = vld [vmem:[%s983_s1 + $0x10] sm:$0xff] (!%p140_p9)   ;;  %s159_s27 = sand.u32 (!%p140_p9), 1, %s805_s13  }
   0xf   : > { %665 = vmatpush3.bf16.msra.mxu1 (!%p140_p9), %v818_v2  ;;  %644 = vmatprep.subr.bf16.mxu0 (!%p140_p9), %v817_v1  ;;  %v744_v14 = vld [vmem:[%s983_s1 + $0x18] sm:$0xff] (!%p140_p9)   ;;  %v745_v15 = vld [vmem:[%s983_s1 + $0x20] sm:$0xff] (!%p140_p9)   ;;  %v746_v16 = vld [vmem:[%s983_s1 + $0x28] sm:$0xff] (!%p140_p9)   ;;  %s528_s4 = sshll.u32 (!%p140_p9), %s862_s16, 7  ;;  %vm437_vm1 = vcmask (!%p140_p9), 261120   ;;  %s820_s11 = smov (!%p140_p9), [#allocation2]  }
  0x10   : > { %666 = vmatprep.subr.bf16.mxu1 (!%p140_p9), %v815_v0  ;;  %660 = vmatprep.mubr.msk.bf16.mxu0 (!%p140_p9), %vm816_vm0, %v817_v1  ;;  %v747_v17 = vld [vmem:[%s983_s1 + $0x30] sm:$0xff] (!%p140_p9)   ;;  %v748_v23 = vld [vmem:[%s983_s1 + $0x38] sm:$0xff] (!%p140_p9)   ;;  %v518_v27 = vld [vmem:[%s984_s2] ss:$0 sm:$0xff] (!%p140_p9)  ;;  %s940_s9 = scalar_lea.hbm (!%p140_p9), %s985_s3, %s528_s4  ;;  %s755_s17 = sshll.u32 (!%p140_p9), %s820_s11, 4  ;;  %s756_s17 = int_to_ptr.vmem [resolvable:$false] %s755_s17 }
  0x11   : > { %740 = vset.pattern.permute.xlu0 (!%p140_p9), %v819_v4  ;;  %645 = vmatpush3.bf16.msra.mxu0 (!%p140_p9), %v741_v11  ;;  %s757_s19 = scalar_lea.vmem (!%p140_p9), %s756_s17, 256 }
  0x12   : > { %646 = vmatprep.subr.bf16.mxu0 (!%p140_p9), %v817_v1 }
  0x13   : > { %667 = vmatpush3.bf16.msra.mxu1 (!%p140_p9), %v818_v2 }
  0x14   : > { %668 = vmatprep.subr.bf16.mxu1 (!%p140_p9), %v815_v0 }
  0x15   : > { %s163_s24 = scalar_select %p162_p10, %s862_s16, 1  ;;  %647 = vmatpush3.bf16.msra.mxu0 %v742_v12 }
  0x16   : > { %648 = vmatprep.subr.bf16.mxu0 %v817_v1  ;;  %s440_s16 = scalar_lea.sflag [#allocation3], %s159_s27 }
  0x17   : > { %669 = vmatpush3.bf16.msra.mxu1 %v818_v2  ;;  %s517_s25 = sshll.u32 %s163_s24, 3 }
  0x18   : > { %670 = vmatprep.subr.bf16.mxu1 %v815_v0  ;;  %s165_s28 = scalar_lea.vmem %s982_s0, %s517_s25 }
  0x19   : > { %v167_v3 = vld [vmem:[%s165_s28] sm:$0xff]  ;;  %649 = vmatpush3.bf16.msra.mxu0 %v743_v13  ;;  %s516_s28 = sshll.u32 %s159_s27, 3 }
  0x1a   : > { %650 = vmatprep.subr.bf16.mxu0 %v817_v1  ;;  %s161_s5 = scalar_lea.vmem [#allocation2], %s516_s28 }
  0x1b   : > { %671 = vmatpush3.bf16.msra.mxu1 %v818_v2  ;;  %s453_s6 = sshll.u32 %s161_s5, 4  ;;  %s942_s6 = int_to_ptr.vmem [resolvable:$true] %s453_s6 }
  0x1c   : > { %672 = vmatprep.subr.bf16.mxu1 %v815_v0  ;;  %s751_s10 = scalar_lea.vmem %s942_s6, 128  ;;  %p758_p0 = scmp.lt.s32.totalorder %s942_s6, %s756_s17 }
  0x1d   : > { %651 = vmatpush3.bf16.msra.mxu0 %v744_v14  ;;  %p752_p11 = scmp.ne.s32.totalorder %s942_s6, %s751_s10  ;;  %p759_p1 = scmp.lt.s32.totalorder %s757_s19, %s751_s10 }
  0x1e   : > { %652 = vmatprep.subr.bf16.mxu0 %v817_v1 }
  0x1f   : > { %673 = vmatpush3.bf16.msra.mxu1 %v818_v2  ;;  %p753_p12 = pnand %p752_p11, %p879_p5  ;;  %p760_p2 = por %p759_p1, %p758_p0 }
  0x20   : > { %674 = vmatprep.subr.bf16.mxu1 %v815_v0 }
  0x21   : > { %653 = vmatpush3.bf16.msra.mxu0 %v745_v15  ;;  %p754_p13 = pneg %p753_p12 }
  0x22   : > { %654 = vmatprep.subr.bf16.mxu0 %v817_v1 }
  0x23   : > { %675 = vmatpush3.bf16.msra.mxu1 %v818_v2  ;;  %p761_p3 = pnand %p760_p2, %p754_p13 }
  0x24   : > { %676 = vmatprep.subr.bf16.mxu1 %v815_v0 }
  0x25   : > { %655 = vmatpush3.bf16.msra.mxu0 %v746_v16 }
  0x26   : > { %656 = vmatprep.subr.bf16.mxu0 %v817_v1 }
  0x27   : > { %677 = vmatpush3.bf16.msra.mxu1 %v818_v2 }
  0x28   : > { %678 = vmatprep.subr.bf16.mxu1 %v815_v0 }
  0x29   : > { %657 = vmatpush3.bf16.msra.mxu0 %v747_v17 }
  0x2a   : > { %658 = vmatprep.subr.bf16.mxu0 %v817_v1 }
  0x2b   : > { %679 = vmatpush3.bf16.msra.mxu1 %v818_v2 }
  0x2c   : > { %680 = vmatprep.subr.bf16.mxu1 %v815_v0 }
  0x2d   : > { %659 = vmatpush3.bf16.msra.mxu0 %v748_v23 }
  0x2e   : > { %607 = vmatmul.mubr.f32.vlgmr.msra.gmra.mrb[0].mxu1 %v167_v3 }
  0x2f   : > { %681 = vmatpush3.bf16.msra.mxu1 %v818_v2  ;;  %641 = vmatprep.mubr.msk.f32.mxu1 %vm816_vm0, %v817_v1 }
  0x30   : > { %682 = vmatprep.subr.bf16.mxu1 %v815_v0 }
  0x33   : > { %683 = vmatpush3.bf16.msra.mxu1 %v818_v2 }
  0x34   : > { %684 = vmatprep.subr.bf16.mxu1 %v815_v0 }
  0x37   : > { %685 = vmatpush3.bf16.msra.mxu1 %v818_v2 }
  0x38   : > { %686 = vmatprep.subr.bf16.mxu1 %v815_v0 }
  0x3b   : > { %687 = vmatpush3.bf16.msra.mxu1 %v818_v2 }
  0x3c   : > { %688 = vmatprep.subr.bf16.mxu1 %v815_v0 }
  0x3f   : > { %689 = vmatpush3.bf16.msra.mxu1 %v818_v2 }
  0x40   : > { %690 = vmatprep.subr.bf16.mxu1 %v815_v0 }
  0x43   : > { %691 = vmatpush3.bf16.msra.mxu1 %v818_v2 }
  0x44   : > { %692 = vmatprep.subr.bf16.mxu1 %v815_v0 }
  0x47   : > { %693 = vmatpush3.bf16.msra.mxu1 %v818_v2 }
  0x48   : > { %694 = vmatprep.subr.bf16.mxu1 %v815_v0 }
  0x4b   : > { %695 = vmatpush3.bf16.msra.mxu1 %v818_v2 }
 0x101   : > { %v234_v5 = vpop.f32.mrb[0].mxu1 }
 0x102   : > { %v238_v6 = vmul.f32 0.0078125, %v234_v5  ;;  %v608_v7 = vpop.f32.mrb[1].mxu1 }
 0x104   : > { %241 = vperm.xlu0 %740, %v238_v6  }
 0x183   : > { %v242_v8 = vpop.permute.xlu0 %241 }
 0x184   : > { %v244_v9 = vsub.f32 %v167_v3, %v242_v8 }
 0x186   : > { %v245_v10 = vmul.f32 %v244_v9, %v244_v9 }
 0x188   : > { %642 = vmatmul.mubr.f32.vlgmr.msra.gmra.mrb[2].mxu1 %v245_v10 }
 0x25b   : > { %v312_v18 = vpop.f32.mrb[2].mxu1 }
 0x25c   : > { %v316_v19 = vmul.f32 0.0078125, %v312_v18  ;;  %v643_v20 = vpop.f32.mrb[3].mxu1 }
 0x25e   : > { %v317_v21 = vadd.f32 1e-05, %v316_v19 }
 0x260   : > { %749 = vrsqrt.f32 %v317_v21 }
 0x26a   : > { %v750_v22 = vpop.eup %749 }
 0x26b   : > { %321 = vperm.xlu0 %740, %v750_v22  }
 0x2ea   : > { %v322_v24 = vpop.permute.xlu0 %321 }
 0x2eb   : > { %v324_v25 = vmul.f32 %v322_v24, %v244_v9 }
 0x2ed   : > { %v325_v26 = vpack.c.bf16 %v324_v25, %v324_v25 }
 0x2ef   : > { %661 = vmatmul.mubr.bf16.vlgmr.msra.gmra.mrb[0].mxu0 %v325_v26 }
 0x3c2   : > { %v431_v28 = vpop.f32.mrb[0].mxu0 }
 0x3c3   : > { %v432_v29 = vadd.f32 %v518_v27, %v431_v28  ;;  %v662_v30 = vpop.f32.mrb[1].mxu0 }
 0x3c4   : > { %v434_v31 = vpop.f32.mrb[2].mxu0 }
 0x3c5   : > { %v663_v32 = vpop.f32.mrb[3].mxu0  ;;  %438 = vst.msk [vmem:[%s161_s5] sm:$0xff] %vm437_vm1, %v432_v29 }
 0x3c6   : > { %764 = shalt.err (!%p761_p3)
}
 0x3c7   : > { %s765_s20 = scalar_lea.hbm %s940_s9, 128  ;;  %s769_s26 = scalar_lea.hbm %s985_s3, 256 }
 0x3c8   : > { %p766_p4 = scmp.ne.s32.totalorder %s940_s9, %s765_s20  ;;  %p770_p9 = scmp.lt.u32.totalorder %s940_s9, %s985_s3 }
 0x3c9   : > { %p771_p10 = scmp.lt.u32.totalorder %s769_s26, %s765_s20  ;;  %p773_p12 = scmp.lt.u32.totalorder %s765_s20, %s940_s9 }
 0x3ca   : > { %p767_p7 = pnand %p766_p4, %p879_p5 }
 0x3cb   : > { %p772_p11 = por %p771_p10, %p770_p9 }
 0x3cc   : > { %p768_p8 = pneg %p767_p7 }
 0x3cd   : > { %p774_p13 = por %p773_p12, %p772_p11 }
 0x3cf   : > { %p775_p0 = pnand %p774_p13, %p768_p8 }
 0x3d1   : > { %778 = shalt.err (!%p775_p0)
}
 0x3d2   : > { %696 = dma.vmem_to_hbm [thread:$0]  (%p879_p5), %s942_s6, 128, %s940_s9, %s440_s16  }
 0x3d3 PF: > { %p702_p1 = scmp.ge.s32.totalorder %s813_s15, 2  ;;  %s465_s29 = sand.u32 1, %s801_s12  }
 0x3d4   : > { %s466_s30 = scalar_lea.sflag [#allocation3], %s465_s29 }
 0x3d5   : > { %p699_p2 = pnand %p702_p1, %p883_p6 }
 0x3d7   : > { %796 = dma.done.wait (!%p699_p2), %s466_s30, 128  }
 0x3d8   : > { %798 = vsyncadd (!%p699_p2), %s466_s30, 4294967168  ;;  %p13_p3 = scmp.ge.s32.totalorder %s866_s18, 4   ;;  %s988_s12 = smov %s805_s13 }
 0x3d9   : > { %s989_s13 = smov %s809_s14  ;;  %s990_s14 = smov %s877_s21 }
 0x3da   : > { %s991_s15 = smov %s866_s18  ;;  %15 = sbr.rel (!%p13_p3) target bundleno = 3 (0x3), region = 67 }
 0x3e1   :  { %471 = vsyncpa [#allocation3], 1 }
 0x3e2   :  { %473 = vsyncpa [#allocation3 + $0x1], 1 }

</bundles_post_ra>
